<compile_context>
chip_gen: v7x
topology: tpu7x:2x2x1
jax: 0.10.0
libtpu: 0.0.40
codegen_flags: <defaults>
</compile_context>

<pallas_src>
import numpy as np
import jax
import jax.numpy as jnp
from jax.experimental import pallas as pl
from jax.experimental.pallas import tpu as pltpu


HP = 128          # hidden dim zero-padded to one full 128-lane tile
MAX_STEPS = 8     # glue safety bound on the RL while-loop (reference has none)

_VMEM = pltpu.MemorySpace.VMEM
_SMEM = pltpu.MemorySpace.SMEM


# ----------------------------------------------------------------------------
# One-time kernels (once per forward)
# ----------------------------------------------------------------------------

def _xw_kernel(nodes_ref, w_ref, out_ref):
    # nodes @ W_embed -- adjacency-independent, computed once per forward.
    out_ref[...] = jnp.dot(nodes_ref[...].astype(jnp.bfloat16), w_ref[...],
                           preferred_element_type=jnp.float32).astype(jnp.bfloat16)


def precompute_xw(nodes_pad, w_embed_bf16):
    npad, _ = nodes_pad.shape
    hp = w_embed_bf16.shape[1]
    return pl.pallas_call(
        _xw_kernel,
        out_shape=jax.ShapeDtypeStruct((npad, hp), jnp.bfloat16),
        in_specs=[pl.BlockSpec(memory_space=_VMEM),
                  pl.BlockSpec(memory_space=_VMEM)],
        out_specs=pl.BlockSpec(memory_space=_VMEM),
    )(nodes_pad, w_embed_bf16)


def _detector_kernel(bval_ref, adj_ref, xw_ref, wv_ref, emb_out_ref, pred_out_ref):
    # emb = relu(adj @ xw);  pred = sigmoid(wv . emb + b)  -> lane-dense (1, N)
    emb = jnp.maximum(jnp.dot(adj_ref[...], xw_ref[...],
                              preferred_element_type=jnp.float32), 0.0)
    emb_out_ref[...] = emb.astype(jnp.bfloat16)
    logits = jax.lax.dot_general(
        wv_ref[...], emb.astype(jnp.bfloat16),
        dimension_numbers=(((1,), (1,)), ((), ())),      # contract last axes
        preferred_element_type=jnp.float32)              # (1, npad)
    pred_out_ref[...] = jax.nn.sigmoid(logits + bval_ref[0])


def base_detector(adj_bf16, xw_bf16, wv_bf16, b_val):
    npad, hp = xw_bf16.shape
    return pl.pallas_call(
        _detector_kernel,
        out_shape=(jax.ShapeDtypeStruct((npad, hp), jnp.bfloat16),
                   jax.ShapeDtypeStruct((1, npad), jnp.float32)),
        in_specs=[pl.BlockSpec(memory_space=_SMEM),
                  pl.BlockSpec(memory_space=_VMEM),
                  pl.BlockSpec(memory_space=_VMEM),
                  pl.BlockSpec(memory_space=_VMEM)],
        out_specs=(pl.BlockSpec(memory_space=_VMEM),
                   pl.BlockSpec(memory_space=_VMEM)),
    )(b_val, adj_bf16, xw_bf16, wv_bf16)


# ----------------------------------------------------------------------------
# Fused per-step kernel: policy -> action selection -> edge cut -> detector
# ----------------------------------------------------------------------------

def _make_fused_step_kernel(num_rows, num_samples, npad, hp):
    f32 = jnp.float32

    def kernel(anom_ref, bval_ref, emb_ref, adj_ref, mask_ref, xw_ref,
               wp_ref, wv_ref,
               adj_out_ref, mask_out_ref, emb_out_ref, pred_out_ref,
               num_out_ref, probs_sc, adj_sc):
        emb_b = emb_ref[...]                         # bf16 (npad, hp)
        adj_f = adj_ref[...].astype(f32)             # (npad, npad)
        adj_sc[...] = adj_f                          # working adjacency copy

        # ---- policy_net: sigmoid(emb @ Wp @ emb^T + adj) * edge_mask ----
        ew = jnp.dot(emb_b, wp_ref[...], preferred_element_type=f32)
        s = jax.lax.dot_general(ew.astype(jnp.bfloat16), emb_b,
                                dimension_numbers=(((1,), (1,)), ((), ())),
                                preferred_element_type=f32)          # (npad, npad)
        probs = jax.nn.sigmoid(s + adj_f) * mask_ref[...].astype(f32)

        # ---- get_action: fill_diagonal_(0) + triu fused as an iota mask ----
        row2 = jax.lax.broadcasted_iota(f32, (npad, npad), 0)
        col2 = jax.lax.broadcasted_iota(f32, (npad, npad), 1)
        probs_sc[...] = jnp.where(col2 > row2, probs, 0.0)           # strict upper

        col_f = jax.lax.broadcasted_iota(f32, (1, npad), 1)          # (1, npad)
        row_f = jax.lax.broadcasted_iota(f32, (npad, 1), 0)          # (npad, 1)
        big = float(npad)

        keep = jnp.ones((npad, npad), f32)
        num = jnp.asarray(0, jnp.int32)

        # static double loop (A * k edges): top-k selection + sequential cuts
        for a in range(num_rows):
            i = anom_ref[a]                                          # int32 scalar
            i_f = i.astype(f32)
            row = probs_sc[pl.ds(i, 1), :]                           # (1, npad)
            row_oh_i = jnp.where(row_f == i_f, 1.0, 0.0)             # (npad, 1)
            col_oh_i = jnp.where(col_f == i_f, 1.0, 0.0)             # (1, npad)
            for _ in range(num_samples):
                m = jnp.max(row)
                j_f = jnp.min(jnp.where(row == m, col_f, big))       # lowest argmax
                col_oh_j = jnp.where(col_f == j_f, 1.0, 0.0)         # (1, npad)
                row_oh_j = jnp.where(row_f == j_f, 1.0, 0.0)         # (npad, 1)
                row = row * (1.0 - col_oh_j)                         # drop for next k
                # hit test against the CURRENT (sequentially cut) adjacency
                adj_row = adj_sc[pl.ds(i, 1), :]                     # (1, npad)
                hit = jnp.sum(adj_row * col_oh_j) != 0.0
                cut = row_oh_i * col_oh_j + row_oh_j * col_oh_i      # (i,j) & (j,i)
                cut = jnp.where(hit, cut, 0.0)
                adj_sc[...] = adj_sc[...] * (1.0 - cut)
                keep = keep * (1.0 - cut)
                num = num + jnp.where(hit, jnp.asarray(1, jnp.int32),
                                      jnp.asarray(0, jnp.int32))

        # ---- base detector on the modified adjacency (fused, no HBM trip) ----
        adj_cut_b = adj_sc[...].astype(jnp.bfloat16)
        emb_new = jnp.maximum(
            jnp.dot(adj_cut_b, xw_ref[...], preferred_element_type=f32), 0.0)
        emb_out_ref[...] = emb_new.astype(jnp.bfloat16)
        logits = jax.lax.dot_general(
            wv_ref[...], emb_new.astype(jnp.bfloat16),
            dimension_numbers=(((1,), (1,)), ((), ())),
            preferred_element_type=f32)                              # (1, npad)
        pred_out_ref[...] = jax.nn.sigmoid(logits + bval_ref[0])

        adj_out_ref[...] = adj_cut_b
        mask_out_ref[...] = (mask_ref[...].astype(f32) * keep).astype(jnp.bfloat16)
        num_out_ref[0] = num

    return kernel


def make_fused_step(num_rows, num_samples, npad, hp):
    kernel = _make_fused_step_kernel(num_rows, num_samples, npad, hp)

    def step(anom_rows, b_val, emb, adj, mask, xw, wp, wv):
        return pl.pallas_call(
            kernel,
            out_shape=(jax.ShapeDtypeStruct((npad, npad), jnp.bfloat16),  # adj'
                       jax.ShapeDtypeStruct((npad, npad), jnp.bfloat16),  # mask'
                       jax.ShapeDtypeStruct((npad, hp), jnp.bfloat16),    # emb'
                       jax.ShapeDtypeStruct((1, npad), jnp.float32),      # pred
                       jax.ShapeDtypeStruct((1,), jnp.int32)),            # num
            in_specs=[pl.BlockSpec(memory_space=_SMEM),    # anomaly rows
                      pl.BlockSpec(memory_space=_SMEM),    # valuator bias
                      pl.BlockSpec(memory_space=_VMEM),    # emb
                      pl.BlockSpec(memory_space=_VMEM),    # adj
                      pl.BlockSpec(memory_space=_VMEM),    # edge mask
                      pl.BlockSpec(memory_space=_VMEM),    # xw  (const)
                      pl.BlockSpec(memory_space=_VMEM),    # Wp  (const)
                      pl.BlockSpec(memory_space=_VMEM)],   # wv  (const)
            out_specs=(pl.BlockSpec(memory_space=_VMEM),
                       pl.BlockSpec(memory_space=_VMEM),
                       pl.BlockSpec(memory_space=_VMEM),
                       pl.BlockSpec(memory_space=_VMEM),
                       pl.BlockSpec(memory_space=_SMEM)),
            scratch_shapes=[pltpu.VMEM((npad, npad), jnp.float32),   # masked probs
                            pltpu.VMEM((npad, npad), jnp.float32)],  # working adj
        )(anom_rows, b_val, emb, adj, mask, xw, wp, wv)

    return step


# ----------------------------------------------------------------------------
# Device-resident RL episode (no per-step host sync)
# ----------------------------------------------------------------------------

def make_run_episode(num_rows, num_samples, target_len, npad, hp):
    step_fn = make_fused_step(num_rows, num_samples, npad, hp)

    @jax.jit
    def run_episode(emb0, adj0, mask0, pred0, xw, wp, wv, b_val, anom_rows):
        def cond(carry):
            _, _, _, _, cut_num, last_num, step, _ = carry
            keep_going = (step == 0) | ((2 * cut_num < target_len) & (last_num > 0))
            return keep_going & (step < MAX_STEPS)

        def body(carry):
            emb, adj, mask, pred, cut_num, last_num, step, nums = carry
            adj_n, mask_n, emb_n, pred_n, num_arr = step_fn(
                anom_rows, b_val, emb, adj, mask, xw, wp, wv)
            num = num_arr[0]
            nums = nums.at[step].set(num)
            return (emb_n, adj_n, mask_n, pred_n,
                    cut_num + num, num, step + 1, nums)

        init = (emb0, adj0, mask0, pred0,
                jnp.asarray(0, jnp.int32), jnp.asarray(1, jnp.int32),
                jnp.asarray(0, jnp.int32), jnp.zeros((MAX_STEPS,), jnp.int32))
        emb, adj, mask, pred, cut_num, last_num, steps, nums = \
            jax.lax.while_loop(cond, body, init)
        return emb, adj, pred, cut_num, steps, nums

    return run_episode


# ----------------------------------------------------------------------------
# Parameters / model glue mirroring the PyTorch reference
# ----------------------------------------------------------------------------

class Params:
    """Synthetic parameters, zero-padded in the hidden dim to 128 lanes and
    stored in bf16 once (padding with zeros is numerically identical)."""

    def __init__(self, key, n_feat, n_hidden, hp=HP):
        k1, k2, k3 = jax.random.split(key, 3)
        w_embed = 0.1 * jax.random.normal(k1, (n_feat, n_hidden), jnp.float32)
        w_policy = 0.1 * jax.random.normal(k2, (n_hidden, n_hidden), jnp.float32)
        w_val = 0.1 * jax.random.normal(k3, (n_hidden,), jnp.float32)
        self.w_embed = (jnp.zeros((n_feat, hp), jnp.float32)
                        .at[:, :n_hidden].set(w_embed)).astype(jnp.bfloat16)
        self.w_policy = (jnp.zeros((hp, hp), jnp.float32)
                         .at[:n_hidden, :n_hidden].set(w_policy)).astype(jnp.bfloat16)
        self.w_val = (jnp.zeros((1, hp), jnp.float32)
                      .at[0, :n_hidden].set(w_val)).astype(jnp.bfloat16)
        self.b_val = jnp.zeros((1,), jnp.float32)


class GDNCom:
    def __init__(self, params, num_episodes=1, num_samples=2):
        self.params = params
        self.num_episodes = num_episodes
        self.num_samples = num_samples

    # --- GDN_com Valuator_aug: threshold-based masking on detector scores ---
    def valuator_aug(self, final_pred, n, anomaly_list, norm_list):
        pred_score = final_pred[0, :n]                 # drop padded nodes
        ps = np.asarray(jax.device_get(pred_score))
        threshold = float(ps.mean() + ps.std())
        mask_index = [list(np.nonzero(ps > threshold)[0].astype(int))]
        return mask_index, threshold, pred_score

    # --- GDN_com.forward ---
    def forward(self, nodes, adj, edge_mask, noisy_list, anomaly_list,
                norm_list, all_label, train_flag=True):
        n = adj.shape[0]
        npad = (-(-n // 128)) * 128                    # lane-dense graph dim

        adj_pad = jnp.zeros((npad, npad), jnp.float32).at[:n, :n].set(
            jnp.asarray(adj, jnp.float32))
        mask_pad = jnp.zeros((npad, npad), jnp.float32).at[:n, :n].set(
            jnp.asarray(edge_mask, jnp.float32))
        nodes_pad = jnp.zeros((npad, nodes.shape[1]), jnp.float32).at[:n, :].set(
            jnp.asarray(nodes, jnp.float32))
        adj_bf = adj_pad.astype(jnp.bfloat16)          # 0/1 values: exact in bf16
        mask_bf = mask_pad.astype(jnp.bfloat16)

        # nodes @ W is adjacency-independent: compute once, reuse every step.
        xw = precompute_xw(nodes_pad, self.params.w_embed)
        emb0, pred0 = base_detector(adj_bf, xw, self.params.w_val,
                                    self.params.b_val)

        anom_rows = jnp.asarray(noisy_list, dtype=jnp.int32)
        run_episode = make_run_episode(len(noisy_list), self.num_samples,
                                       len(noisy_list), npad, HP)

        # TODO(synk): reference performs per-step loss.backward()/optimizer.step()
        #             with an sklearn-AUC reward; no Pallas equivalent, skipped
        #             (does not affect the returned outputs).
        pred_f = pred0
        cut_num_list, cut_num = [], 0
        for _ in range(self.num_episodes):             # env.reset() each episode
            emb_f, adj_f, pred_f, cut_num_dev, steps_dev, nums_dev = run_episode(
                emb0, adj_bf, mask_bf, pred0, xw, self.params.w_policy,
                self.params.w_val, self.params.b_val, anom_rows)
            # single host sync per episode (not per step)
            cut_num_np, steps_np, nums_np = jax.device_get(
                (cut_num_dev, steps_dev, nums_dev))
            cut_num = int(cut_num_np)
            cut_num_list = [int(v) for v in np.asarray(nums_np)[:int(steps_np)]]

        mask_index, thresholds, pred_score = self.valuator_aug(
            pred_f, n, anomaly_list, norm_list)
        return mask_index, thresholds, pred_score


# ----------------------------------------------------------------------------
# Main
# ----------------------------------------------------------------------------

if __name__ == "__main__":
    key = jax.random.PRNGKey(0)
    k_feat, k_adj, k_lab, k_par = jax.random.split(key, 4)

    N, F, H = 64, 32, 32   # small graph: 64 nodes, 32 features, 32 hidden

    nodes = jax.random.normal(k_feat, (N, F), jnp.float32)

    # symmetric 0/1 adjacency, zero diagonal
    a = (jax.random.uniform(k_adj, (N, N)) < 0.15).astype(jnp.float32)
    adj = jnp.triu(a, 1)
    adj = adj + adj.T

    edge_mask = np.ones((N, N), dtype=np.float32)
    all_label = np.asarray(
        (jax.random.uniform(k_lab, (N,)) < 0.2).astype(jnp.int32))
    noisy_list = [1, 5, 9, 13]
    anomaly_list = [2, 7, 11]
    norm_list = [0, 3, 4, 6, 8]

    params = Params(k_par, F, H)
    model = GDNCom(params, num_episodes=1, num_samples=2)

    mask_index, thresholds, pred_score = model.forward(
        nodes, adj, edge_mask, noisy_list, anomaly_list, norm_list, all_label,
        train_flag=True)

    jax.block_until_ready(pred_score)
    assert pred_score.shape == (N,)
    print("KERNEL_OK")
</pallas_src>

<mosaic_0001>
module attributes {stable_mosaic.version = 11 : i64} {
  func.func @_xw_kernel(%arg0: memref<128x32xf32, #tpu.memory_space<vmem>>, %arg1: memref<32x128xbf16, #tpu.memory_space<vmem>>, %arg2: memref<128x128xbf16, #tpu.memory_space<vmem>>) attributes {dimension_semantics = [], scalar_prefetch = 0 : i64, scratch_operands = 0 : i64, tpu.core_type = #tpu.core_type<tc>} {
    %c0 = arith.constant 0 : index
    %c0_0 = arith.constant 0 : index
    %0 = vector.load %arg0[%c0, %c0_0] : memref<128x32xf32, #tpu.memory_space<vmem>>, vector<128x32xf32>
    %1 = arith.truncf %0 : vector<128x32xf32> to vector<128x32xbf16>
    %c0_1 = arith.constant 0 : index
    %c0_2 = arith.constant 0 : index
    %2 = vector.load %arg1[%c0_1, %c0_2] : memref<32x128xbf16, #tpu.memory_space<vmem>>, vector<32x128xbf16>
    %cst = arith.constant dense<0.000000e+00> : vector<128x128xf32>
    %3 = tpu.matmul %1, %2, %cst {dimension_numbers = #tpu.dot_dimension_numbers<[1], [0], [0], [1], [0, 0, 1, 1], [], []>} : vector<128x32xbf16>, vector<32x128xbf16>, vector<128x128xf32> -> vector<128x128xf32>
    %4 = arith.truncf %3 : vector<128x128xf32> to vector<128x128xbf16>
    %c0_3 = arith.constant 0 : index
    %c0_4 = arith.constant 0 : index
    %5 = vector.load %arg2[%c0_3, %c0_4] : memref<128x128xbf16, #tpu.memory_space<vmem>>, vector<128x128xbf16>
    tpu.vector_store %arg2[%c0_3, %c0_4], %4 {strides = array<i32>} : memref<128x128xbf16, #tpu.memory_space<vmem>>, vector<128x128xbf16>,
    return
  }
}

</mosaic_0001>

<bundles_post_ra>
// kernel: tpu_custom_call.1
= control target key start
LH: loop header
LB: loop body
LE: loop exit
PB: predicated region body
PF: predicated region fallthrough
CT: control target
= control target key end

     0   :  { %vm53_vm0 = vcmask 261120   ;;  %s515_s0 = inlined_call_operand.vmem [shape: f32[128,32], index: 0, kind: input, shape index: {}]   ;;  %s516_s1 = inlined_call_operand.vmem [shape: bf16[32,128], index: 1, kind: input, shape index: {}]   ;;  %s517_s2 = inlined_call_operand.hbm [shape: bf16[128,128], index: 2, kind: output, shape index: {}]  }
   0x1   :  { %v397_v0 = vld [vmem:[%s516_s1] sm:$0xff]   ;;  %v398_v1 = vld [vmem:[%s516_s1 + $0x8] sm:$0xff]   ;;  %v15_v7 = vld [vmem:[%s515_s0 + $0x10] sm:$0xff] }
   0x2   :  { %370 = vmatprep.subr.bf16.mxu0 %v397_v0  ;;  %390 = vmatprep.subr.bf16.mxu1 %v397_v0  ;;  %v13_v2 = vld [vmem:[%s515_s0] sm:$0xff]  ;;  %v14_v3 = vld [vmem:[%s515_s0 + $0x8] sm:$0xff]  ;;  %v16_v8 = vld [vmem:[%s515_s0 + $0x18] sm:$0xff] }
   0x3   :  { %v21_v4 = vld [vmem:[%s515_s0 + $0x40] sm:$0xff]  ;;  %371 = vmatpush3.bf16.msra.mxu0 %v397_v0  ;;  %392 = vmatpush3.bf16.msra.mxu1 %v397_v0  ;;  %v29_v5 = vpack.c.bf16 %v14_v3, %v13_v2  ;;  %v22_v6 = vld [vmem:[%s515_s0 + $0x48] sm:$0xff]  ;;  %v23_v10 = vld [vmem:[%s515_s0 + $0x50] sm:$0xff]  ;;  %v30_v16 = vpack.c.bf16 %v16_v8, %v15_v7 }
   0x4   :  { %372 = vmatprep.subr.bf16.mxu0 %v398_v1  ;;  %391 = vmatprep.subr.bf16.mxu1 %v398_v1  ;;  %v33_v9 = vpack.c.bf16 %v22_v6, %v21_v4  ;;  %v24_v11 = vld [vmem:[%s515_s0 + $0x58] sm:$0xff]  ;;  %v17_v12 = vld [vmem:[%s515_s0 + $0x20] sm:$0xff]  ;;  %v18_v13 = vld [vmem:[%s515_s0 + $0x28] sm:$0xff] }
   0x5   :  { %374 = vmatprep.mubr.msk.bf16.mxu0 %vm53_vm0, %v29_v5  ;;  %v25_v14 = vld [vmem:[%s515_s0 + $0x60] sm:$0xff]  ;;  %v26_v15 = vld [vmem:[%s515_s0 + $0x68] sm:$0xff]  ;;  %v34_v17 = vpack.c.bf16 %v24_v11, %v23_v10  ;;  %v31_v18 = vpack.c.bf16 %v18_v13, %v17_v12 }
   0x6   :  { %382 = vmatprep.mubr.msk.bf16.mxu1 %vm53_vm0, %v33_v9  ;;  %v35_v19 = vpack.c.bf16 %v26_v15, %v25_v14 }
   0x7   :  { %373 = vmatpush3.bf16.msra.mxu0 %v398_v1  ;;  %393 = vmatpush3.bf16.msra.mxu1 %v398_v1 }
   0x8   :  { %7 = vsyncpa [#allocation3], 0  ;;  %v19_v20 = vld [vmem:[%s515_s0 + $0x30] sm:$0xff]  ;;  %v20_v21 = vld [vmem:[%s515_s0 + $0x38] sm:$0xff] }
   0x9   :  { %v27_v22 = vld [vmem:[%s515_s0 + $0x70] sm:$0xff]  ;;  %v28_v23 = vld [vmem:[%s515_s0 + $0x78] sm:$0xff]  ;;  %v32_v24 = vpack.c.bf16 %v20_v21, %v19_v20  ;;  %s423_s0 = smov [#allocation2]  }
   0xa   :  { %375 = vmatmul.mubr.msk.bf16.vlgmr.msra.gmra.mrb[0].mxu0 %vm53_vm0, %v30_v16  ;;  %383 = vmatmul.mubr.msk.bf16.vlgmr.msra.gmra.mrb[0].mxu1 %vm53_vm0, %v34_v17  ;;  %v36_v25 = vpack.c.bf16 %v28_v23, %v27_v22  ;;  %s260_s16 = sshll.u32 %s423_s0, 4  ;;  %s261_s16 = int_to_ptr.vmem [resolvable:$true] %s260_s16 }
   0xb   :  { %378 = vmatprep.mubr.msk.bf16.mxu0 %vm53_vm0, %v31_v18  ;;  %386 = vmatprep.mubr.msk.bf16.mxu1 %vm53_vm0, %v35_v19  ;;  %s399_s17 = scalar_lea.vmem %s261_s16, 1024  ;;  %p404_p1 = scmp.lt.s32.totalorder %s261_s16, %s261_s16 }
   0xc   :  { %p400_p0 = scmp.ne.s32.totalorder %s261_s16, %s399_s17  ;;  %p405_p2 = scmp.lt.s32.totalorder %s399_s17, %s399_s17 }
   0xe   :  { %p406_p3 = por %p405_p2, %p404_p1 }
  0x10   :  { %p407_p4 = pnand %p406_p3, %p400_p0 }
  0x12   :  { %379 = vmatmul.mubr.msk.bf16.gmra.mrb[4].mxu0 %vm53_vm0, %v32_v24  ;;  %387 = vmatmul.mubr.msk.bf16.gmra.mrb[4].mxu1 %vm53_vm0, %v36_v25 }
  0xdd   :  { %v376_v26 = vpop.f32.mrb[0].mxu0  ;;  %v384_v27 = vpop.f32.mrb[0].mxu1 }
  0xde   :  { %v112_v28 = vpop.f32.mrb[1].mxu0  ;;  %v144_v29 = vpop.f32.mrb[1].mxu1 }
  0xdf   :  { %v377_v30 = vpop.f32.mrb[2].mxu0  ;;  %v385_v31 = vpop.f32.mrb[2].mxu1 }
  0xe0   :  { %v321_v32 = vpack.c.bf16 %v377_v30, %v376_v26  ;;  %v341_v33 = vpack.c.bf16 %v385_v31, %v384_v27  ;;  %v115_v34 = vpop.f32.mrb[3].mxu0  ;;  %v147_v35 = vpop.f32.mrb[3].mxu1 }
  0xe1   :  { %v316_v36 = vpack.c.bf16 %v115_v34, %v112_v28  ;;  %v336_v37 = vpack.c.bf16 %v147_v35, %v144_v29 }
  0xe2   :  { %353 = vst [vmem:[#allocation2 + $0x8] sm:$0xff] %v321_v32   ;;  %357 = vst [vmem:[#allocation2 + $0x28] sm:$0xff] %v341_v33  }
  0xe3   :  { %317 = vst [vmem:[#allocation2] sm:$0xff] %v316_v36   ;;  %356 = vst [vmem:[#allocation2 + $0x20] sm:$0xff] %v336_v37  }
  0xe5   :  { %v380_v38 = vpop.f32.mrb[4].mxu0  ;;  %v388_v39 = vpop.f32.mrb[4].mxu1 }
  0xe6   :  { %v128_v40 = vpop.f32.mrb[5].mxu0  ;;  %v160_v41 = vpop.f32.mrb[5].mxu1 }
  0xe7   :  { %v381_v42 = vpop.f32.mrb[6].mxu0  ;;  %v389_v43 = vpop.f32.mrb[6].mxu1 }
  0xe8   :  { %v331_v44 = vpack.c.bf16 %v381_v42, %v380_v38  ;;  %v351_v45 = vpack.c.bf16 %v389_v43, %v388_v39  ;;  %v131_v46 = vpop.f32.mrb[7].mxu0  ;;  %v163_v47 = vpop.f32.mrb[7].mxu1 }
  0xe9   :  { %v326_v48 = vpack.c.bf16 %v131_v46, %v128_v40  ;;  %v346_v49 = vpack.c.bf16 %v163_v47, %v160_v41 }
  0xea   :  { %355 = vst [vmem:[#allocation2 + $0x18] sm:$0xff] %v331_v44   ;;  %359 = vst [vmem:[#allocation2 + $0x38] sm:$0xff] %v351_v45  }
  0xeb   :  { %354 = vst [vmem:[#allocation2 + $0x10] sm:$0xff] %v326_v48   ;;  %358 = vst [vmem:[#allocation2 + $0x30] sm:$0xff] %v346_v49  }
  0xec   :  { %410 = shalt.err (!%p407_p4)
}
  0xed   :  { %s411_s1 = scalar_lea.hbm %s517_s2, 1024 }
  0xee   :  { %p412_p5 = scmp.ne.s32.totalorder %s517_s2, %s411_s1  ;;  %p415_p6 = scmp.lt.u32.totalorder %s411_s1, %s517_s2 }
  0xf0   :  { %p417_p7 = pnand %p415_p6, %p412_p5 }
  0xf2   :  { %420 = shalt.err (!%p417_p7)
}
  0xf3   :  { %s424_s24 = smov 64   ;;  %s425_s25 = smov 4  }
  0xf4   :  { %266 = dma.vmem_to_hbm [thread:$0]  %s261_s16, 1024, %s517_s2, [#allocation3], %s424_s24, %s424_s24, %s425_s25  }
  0xf5   :  { %421 = dma.done.wait [#allocation3], 1024  }
  0xf6   :  { %422 = vsyncadd [#allocation3], 4294966272 }
  0xf7   :  { %270 = vsyncpa [#allocation3], 1 }

</bundles_post_ra>
